<compile_context>
chip_gen: v6e
topology: v6e:2x2x1
jax: 0.10.0
libtpu: 0.0.40
codegen_flags: <defaults>
</compile_context>

<pallas_src>
import numpy as np
import jax
import jax.numpy as jnp
from jax.experimental import pallas as pl
from jax.experimental.pallas import tpu as pltpu

# ----------------------------------------------------------------------------
# Hyperparameters (orthogonal config: in_channels == out_channels * s0 * s1)
# ----------------------------------------------------------------------------
IN_CHANNELS = 16
OUT_CHANNELS = 4
KERNEL_SIZE = (4, 4)
STRIDE = (2, 2)
DILATION = (1, 1)
GROUPS = 1
BATCH = 2
HEIGHT = 8
WIDTH = 8


# ----------------------------------------------------------------------------
# Parameter construction (plain JAX glue) — mirrors the torch module's
# paraunitary construction.  geotorch's expm trivialization is replaced by a
# direct deterministic orthogonal init (permutation matrices + QR factors).
# ----------------------------------------------------------------------------
def _derived_dims():
    in_cpg = IN_CHANNELS // GROUPS
    out_cpg = OUT_CHANNELS // GROUPS
    out_cpg_ = out_cpg * STRIDE[0] * STRIDE[1]
    C = max(in_cpg, out_cpg_)
    ksps = (KERNEL_SIZE[0] // STRIDE[0], KERNEL_SIZE[1] // STRIDE[1])
    return in_cpg, out_cpg, out_cpg_, C, ksps


def init_ortho_params(key):
    # TODO(synk): geotorch's expm/cayley trivialization has no Pallas/JAX port
    # here; parameters are initialized directly as (semi-)orthogonal matrices.
    _, _, _, C, ksps = _derived_dims()
    params = []
    for _ in range(GROUPS):
        gp = {}
        for axis in range(2):
            key, k_perm = jax.random.split(key)
            # init='permutation': identity with permuted columns.
            perm = jax.random.permutation(k_perm, C)
            gp[("A", axis)] = jnp.eye(C, dtype=jnp.float32)[:, perm]
            subs = []
            for _pos in range(2, ksps[axis] + 1):
                key, k_sub = jax.random.split(key)
                gauss = jax.random.normal(k_sub, (C, C // 2), dtype=jnp.float32)
                q, _ = jnp.linalg.qr(gauss)  # (C, C//2) orthonormal columns
                subs.append(q)
            gp[("sub", axis)] = subs
        params.append(gp)
    return params


def paraunitary(gp):
    in_cpg, _, out_cpg_, C, ksps = _derived_dims()
    if sum(ksps) == 2:
        kernel = gp[("A", 0)][:, :, None, None]
    else:
        factors = []
        for axis in range(2):
            factor = gp[("A", axis)][None]  # (1, C, C)
            subs = gp[("sub", axis)]
            for pos in range(2, ksps[axis] + 1):
                zeros = jnp.zeros_like(factor)
                fpl = jnp.concatenate([zeros, factor], axis=0)
                fpr = jnp.concatenate([factor, zeros], axis=0)
                M = subs[pos - 2]  # (C, C//2)
                if pos % 2 == 0:
                    factor = fpr + jnp.einsum("kst,sr,nr->knt", fpl - fpr, M, M)
                else:
                    factor = fpl + jnp.einsum("kst,tr,nr->ksn", fpr - fpl, M, M)
            factors.append(factor)
        kernel = jnp.einsum("hsr,wrt->sthw", factors[0], factors[1])
    return kernel[:in_cpg, :out_cpg_]


def build_weights(params):
    in_cpg, out_cpg, _, _, ksps = _derived_dims()
    s0, s1 = STRIDE
    kernels = []
    for gp in params:
        k = paraunitary(gp)
        if s0 > 1 or s1 > 1:
            k = k.reshape(in_cpg, s0, s1, out_cpg, ksps[0], ksps[1])
            k = jnp.transpose(k, (0, 3, 4, 1, 5, 2))
            k = k.reshape(in_cpg, out_cpg, ksps[0] * s0, ksps[1] * s1)
        kernels.append(k)
    # (in_channels, out_channels_per_group, K0, K1)  -- conv_transpose2d layout
    return jnp.concatenate(kernels, axis=0)


# ----------------------------------------------------------------------------
# "auto" + "circular" padding bookkeeping (same arithmetic as the torch module)
# ----------------------------------------------------------------------------
def auto_circular_padding():
    d, K, s = DILATION, KERNEL_SIZE, STRIDE
    kernel_size_ = tuple(d[i] * (K[i] - 1) + 1 for i in (0, 1))
    kernel_margin = tuple((kernel_size_[i] // 2, (kernel_size_[i] - 1) // 2) for i in (0, 1))
    shift = tuple(s[i] // 2 for i in (0, 1))
    input_padding = tuple(
        (kernel_margin[i][1] + shift[i], kernel_margin[i][0] - shift[i] + s[i] - 1)
        for i in (0, 1))
    circular_padding = tuple(
        tuple(input_padding[i][j] // s[i] for j in (0, 1)) for i in (0, 1))
    zeros_padding = tuple(
        tuple(input_padding[i][j] - s[i] * circular_padding[i][j] for j in (0, 1))
        for i in (0, 1))
    cropping = tuple(
        tuple(zeros_padding[i][j] - max(zeros_padding[i]) for j in (0, 1)) for i in (0, 1))
    padding_ = tuple(kernel_size_[i] - 1 - max(zeros_padding[i]) for i in (0, 1))
    return circular_padding, cropping, padding_


def apply_crop(out, cropping):
    # cropping per-dim: ((h_l, h_r), (w_l, w_r)), values <= 0 (F.pad semantics).
    (hl, hr), (wl, wr) = cropping
    if hl == hr == wl == wr == 0:
        return out
    H, W = out.shape[2], out.shape[3]
    return out[:, :, -hl:H + hr, -wl:W + wr]


# ----------------------------------------------------------------------------
# Pallas kernel: fully fused phase-decomposed transposed convolution
# ----------------------------------------------------------------------------
def _fused_matmul_kernel(w_ref, x_ref, o_ref):
    # Single MXU matmul: (n_phase*Cout, Kf) x (Kf, rows) -> (n_phase*Cout, rows).
    # Output last dim = rows (multiple of 128) -> lane-dense, unmasked stores.
    o_ref[...] = jnp.dot(w_ref[...], x_ref[...],
                         preferred_element_type=jnp.float32)


def pallas_conv_transpose2d(x_pad, weights, stride, padding, dilation):
    """x_pad: (B, Cin, Hp, Wp) NCHW, circularly padded.
    weights: (Cin, Cout, K0, K1) in torch conv_transpose2d layout.
    Returns (B, Cout, Ho, Wo)."""
    assert dilation == (1, 1)  # TODO(synk): dilation > 1 not implemented in the Pallas path
    assert GROUPS == 1         # TODO(synk): grouped transposed conv not implemented
    B, Cin, Hp, Wp = x_pad.shape
    Cin_w, Cout, K0, K1 = weights.shape
    assert Cin_w == Cin
    s0, s1 = stride
    p0, p1 = padding
    Ho = (Hp - 1) * s0 - 2 * p0 + (K0 - 1) + 1
    Wo = (Wp - 1) * s1 - 2 * p1 + (K1 - 1) + 1
    assert Ho % s0 == 0 and Wo % s1 == 0
    Q0, Q1 = Ho // s0, Wo // s1

    # Static analysis of the phase decomposition: union of tap offsets into the
    # padded input.  With "auto"/"circular" padding every tap window is in-bounds.
    def n_offsets(p, s, K, Q, L):
        offs = set()
        for r in range(s):
            for k in range(K):
                if (r + p - k) % s != 0:
                    continue
                off = (r + p - k) // s
                assert 0 <= off and off + Q <= L, "unsupported padding configuration"
                offs.add(off)
        return max(offs) + 1

    n_off0 = n_offsets(p0, s0, K0, Q0, Hp)
    n_off1 = n_offsets(p1, s1, K1, Q1, Wp)
    tap_offsets = [(o0, o1) for o0 in range(n_off0) for o1 in range(n_off1)]
    n_phase = s0 * s1
    n_tap = len(tap_offsets)
    rows = B * Q0 * Q1          # matmul N (lane-dense output)
    Kf = n_tap * Cin            # fused contraction dim
    Mf = n_phase * Cout         # fused output rows (phase-major, Cout-minor)

    # ---- trace-time (numpy) gather indices ----------------------------------
    # Fused weight: w_fused[ph*Cout + cout, tap*Cin + cin] = W[cin, cout, k0, k1],
    # invalid (phase, tap) combos point at an appended zero slot (index n_w).
    n_w = Cin * Cout * K0 * K1
    idx_w = np.full((Mf, Kf), n_w, dtype=np.int32)
    # element [cout, cin] = cin*Cout + cout  (flat index prefix into W)
    cout_cin = np.arange(Cout)[:, None] + Cout * np.arange(Cin)[None, :]
    for r0 in range(s0):
        for r1 in range(s1):
            ph = r0 * s1 + r1
            for t, (o0, o1) in enumerate(tap_offsets):
                k0 = r0 + p0 - o0 * s0
                k1 = r1 + p1 - o1 * s1
                if 0 <= k0 < K0 and 0 <= k1 < K1:
                    idx_w[ph * Cout:(ph + 1) * Cout, t * Cin:(t + 1) * Cin] = \
                        (cout_cin * K0 + k0) * K1 + k1

    # Lane-dense im2col LHS: lhs_t[tap*Cin + cin, (b*Q0+q0)*Q1 + q1]
    #   = x_pad[b, cin, o0+q0, o1+q1]     (single gather, no slice/stack chain)
    o0s = np.array([o for (o, _) in tap_offsets]).reshape(n_tap, 1, 1, 1, 1)
    o1s = np.array([o for (_, o) in tap_offsets]).reshape(n_tap, 1, 1, 1, 1)
    cin_ = np.arange(Cin).reshape(1, Cin, 1, 1, 1)
    b_ = np.arange(B).reshape(1, 1, B, 1, 1)
    q0_ = np.arange(Q0).reshape(1, 1, 1, Q0, 1)
    q1_ = np.arange(Q1).reshape(1, 1, 1, 1, Q1)
    idx_lhs = (((b_ * Cin + cin_) * Hp + (o0s + q0_)) * Wp + (o1s + q1_)) \
        .reshape(Kf, rows).astype(np.int32)

    # ---- tiny producers (one gather each) ------------------------------------
    w_flat = jnp.concatenate([weights.astype(jnp.float32).reshape(-1),
                              jnp.zeros((1,), jnp.float32)])
    w_fused = jnp.take(w_flat, idx_w)                                  # (Mf, Kf)
    lhs_t = jnp.take(x_pad.astype(jnp.float32).reshape(-1), idx_lhs)   # (Kf, rows)

    out_t = pl.pallas_call(
        _fused_matmul_kernel,
        out_shape=jax.ShapeDtypeStruct((Mf, rows), jnp.float32),
        # Grid-less: whole arrays resident in VMEM, single invocation.
        in_specs=[pl.BlockSpec(memory_space=pltpu.MemorySpace.VMEM),
                  pl.BlockSpec(memory_space=pltpu.MemorySpace.VMEM)],
        out_specs=pl.BlockSpec(memory_space=pltpu.MemorySpace.VMEM),
        compiler_params=pltpu.CompilerParams(
            # Let XLA fuse the im2col producer into the pallas_call input so
            # lhs_t is never materialized in HBM (largest win at this size).
            allow_input_fusion=[False, True]),
        cost_estimate=pl.CostEstimate(
            flops=2 * Mf * Kf * rows,
            transcendentals=0,
            bytes_accessed=4 * (Mf * Kf + Kf * rows + Mf * rows)),
    )(w_fused, lhs_t)

    # Depth-to-space reassembly (single reshape/transpose; fuses with the crop):
    # out_t[(r0*s1+r1)*Cout + cout, (b*Q0+q0)*Q1 + q1] -> out[b, cout, q0*s0+r0, q1*s1+r1]
    out = out_t.reshape(s0, s1, Cout, B, Q0, Q1)
    out = jnp.transpose(out, (3, 2, 4, 0, 5, 1))      # (B, Cout, Q0, s0, Q1, s1)
    return out.reshape(B, Cout, Q0 * s0, Q1 * s1)


@jax.jit
def ortho_conv_transpose2d_forward(x, weights):
    """Forward pass of OrthoConvTranspose2d (circular padding_mode, padding='auto',
    bias=False, reverse=False). x: (B, Cin, H, W) NCHW."""
    circ, crop, pad_ = auto_circular_padding()
    x_pad = jnp.pad(x, ((0, 0), (0, 0), circ[0], circ[1]), mode="wrap")
    out = pallas_conv_transpose2d(x_pad, weights, STRIDE, pad_, DILATION)
    return apply_crop(out, crop)
    # TODO(synk): reverse pass (conv_reverse) and bias are not implemented.


# ----------------------------------------------------------------------------
# Plain-JAX reference (XLA conv) for validation
# ----------------------------------------------------------------------------
def conv_transpose2d_ref(x, w, stride, padding, dilation):
    # x: (B, Cin, H, W); w: (Cin, Cout, Kh, Kw)  -- PyTorch conv_transpose2d layout
    Kh, Kw = w.shape[2], w.shape[3]
    w_t = jnp.transpose(jnp.flip(w, axis=(2, 3)), (1, 0, 2, 3))  # (Cout, Cin, Kh, Kw)
    ph = dilation[0] * (Kh - 1) - padding[0]
    pw = dilation[1] * (Kw - 1) - padding[1]
    return jax.lax.conv_general_dilated(
        x, w_t, window_strides=(1, 1),
        padding=[(ph, ph), (pw, pw)],
        lhs_dilation=stride, rhs_dilation=dilation,
        dimension_numbers=("NCHW", "OIHW", "NCHW"))


def forward_ref(x, weights):
    circ, crop, pad_ = auto_circular_padding()
    x_pad = jnp.pad(x, ((0, 0), (0, 0), circ[0], circ[1]), mode="wrap")
    out = conv_transpose2d_ref(x_pad, weights, STRIDE, pad_, DILATION)
    return apply_crop(out, crop)


if __name__ == "__main__":
    key = jax.random.PRNGKey(0)
    pkey, xkey = jax.random.split(key)

    params = init_ortho_params(pkey)
    weights = build_weights(params)  # (16, 4, 4, 4)

    x = jax.random.normal(xkey, (BATCH, IN_CHANNELS, HEIGHT, WIDTH), dtype=jnp.float32)

    out = jax.block_until_ready(ortho_conv_transpose2d_forward(x, weights))
    assert out.shape == (BATCH, OUT_CHANNELS, HEIGHT * STRIDE[0], WIDTH * STRIDE[1])

    ref = jax.block_until_ready(forward_ref(x, weights))
    np.testing.assert_allclose(np.asarray(out), np.asarray(ref), rtol=1e-4, atol=1e-4)

    print("KERNEL_OK")
</pallas_src>

<mosaic_0001>
module attributes {stable_mosaic.version = 11 : i64} {
  func.func @_fused_matmul_kernel(%arg0: memref<16x144xf32, #tpu.memory_space<vmem>>, %arg1: memref<144x128xf32, #tpu.memory_space<vmem>>, %arg2: memref<16x128xf32, #tpu.memory_space<vmem>>) attributes {dimension_semantics = [], scalar_prefetch = 0 : i64, scratch_operands = 0 : i64, tpu.core_type = #tpu.core_type<tc>} {
    %c0 = arith.constant 0 : index
    %c0_0 = arith.constant 0 : index
    %0 = vector.load %arg0[%c0, %c0_0] : memref<16x144xf32, #tpu.memory_space<vmem>>, vector<16x144xf32>
    %c0_1 = arith.constant 0 : index
    %c0_2 = arith.constant 0 : index
    %1 = vector.load %arg1[%c0_1, %c0_2] : memref<144x128xf32, #tpu.memory_space<vmem>>, vector<144x128xf32>
    %cst = arith.constant dense<0.000000e+00> : vector<16x128xf32>
    %2 = tpu.matmul %0, %1, %cst {dimension_numbers = #tpu.dot_dimension_numbers<[1], [0], [0], [1], [0, 0, 1, 1], [], []>} : vector<16x144xf32>, vector<144x128xf32>, vector<16x128xf32> -> vector<16x128xf32>
    %c0_3 = arith.constant 0 : index
    %c0_4 = arith.constant 0 : index
    %3 = vector.load %arg2[%c0_3, %c0_4] : memref<16x128xf32, #tpu.memory_space<vmem>>, vector<16x128xf32>
    tpu.vector_store %arg2[%c0_3, %c0_4], %2 {strides = array<i32>} : memref<16x128xf32, #tpu.memory_space<vmem>>, vector<16x128xf32>,
    return
  }
}

</mosaic_0001>

<bundles_post_ra>
// kernel: ortho_conv_transpose2d_forward.2
= control target key start
LH: loop header
LB: loop body
LE: loop exit
PB: predicated region body
PF: predicated region fallthrough
CT: control target
= control target key end

     0   :  { %v283_v1 = vmov 0.0   ;;  %vm139_vm0 = vcmask 130048   ;;  %s407_s0 = inlined_call_operand.vmem [shape: f32[16,144], index: 0, kind: input, shape index: {}]   ;;  %s408_s1 = inlined_call_operand.vmem [shape: f32[18432], index: 1, kind: input, shape index: {}]   ;;  %s409_s2 = inlined_call_operand.vmem [shape: f32[16,128], index: 2, kind: output, shape index: {}]  }
   0x1   :  { %v241_v0 = vld [vmem:[%s408_s1 + $0x78] sm:$0xff]  ;;  %146 = vmatprep.subr.mxu0 %v283_v1  ;;  %246 = vmatprep.subr.mxu1 %v283_v1  ;;  %v240_v2 = vld [vmem:[%s408_s1 + $0x70] sm:$0xff]  ;;  %v239_v3 = vld [vmem:[%s408_s1 + $0x68] sm:$0xff] }
   0x2   :  { %147 = vmatpush1.msra.mxu0 %v241_v0  ;;  %264 = vmatpush1.msra.mxu1 %v241_v0  ;;  %v238_v4 = vld [vmem:[%s408_s1 + $0x60] sm:$0xff]  ;;  %v237_v5 = vld [vmem:[%s408_s1 + $0x58] sm:$0xff]  ;;  %v236_v6 = vld [vmem:[%s408_s1 + $0x50] sm:$0xff] }
   0x3   :  { %148 = vmatprep.subr.mxu0 %v283_v1  ;;  %247 = vmatprep.subr.mxu1 %v283_v1  ;;  %v235_v7 = vld [vmem:[%s408_s1 + $0x48] sm:$0xff]  ;;  %v234_v8 = vld [vmem:[%s408_s1 + $0x40] sm:$0xff]  ;;  %v233_v9 = vld [vmem:[%s408_s1 + $0x38] sm:$0xff] }
   0x4   :  { %149 = vmatpush1.msra.mxu0 %v240_v2  ;;  %265 = vmatpush1.msra.mxu1 %v240_v2  ;;  %v232_v10 = vld [vmem:[%s408_s1 + $0x30] sm:$0xff]  ;;  %v231_v11 = vld [vmem:[%s408_s1 + $0x28] sm:$0xff]  ;;  %v230_v12 = vld [vmem:[%s408_s1 + $0x20] sm:$0xff] }
   0x5   :  { %150 = vmatprep.subr.mxu0 %v283_v1  ;;  %248 = vmatprep.subr.mxu1 %v283_v1  ;;  %v229_v13 = vld [vmem:[%s408_s1 + $0x18] sm:$0xff]  ;;  %v228_v14 = vld [vmem:[%s408_s1 + $0x10] sm:$0xff]  ;;  %v227_v15 = vld [vmem:[%s408_s1 + $0x8] sm:$0xff] }
   0x6   :  { %151 = vmatpush1.msra.mxu0 %v239_v3  ;;  %266 = vmatpush1.msra.mxu1 %v239_v3  ;;  %v11_v16 = vld [vmem:[%s408_s1] sm:$0xff]  ;;  %v243_v17 = vld [vmem:[%s408_s1 + $0x88] sm:$0xff]  ;;  %v120_v20 = vld [vmem:[%s407_s0 + $0x18] sm:$0xff] }
   0x7   :  { %152 = vmatprep.subr.mxu0 %v283_v1  ;;  %249 = vmatprep.subr.mxu1 %v283_v1  ;;  %v242_v18 = vld [vmem:[%s408_s1 + $0x80] sm:$0xff]  ;;  %v118_v19 = vld [vmem:[%s407_s0 + $0x8] sm:$0xff]  ;;  %v119_v22 = vld [vmem:[%s407_s0 + $0x10] sm:$0xff] }
   0x8   :  { %153 = vmatpush1.msra.mxu0 %v238_v4  ;;  %267 = vmatpush1.msra.mxu1 %v238_v4  ;;  %v117_v21 = vld [vmem:[%s407_s0] sm:$0xff] }
   0x9   :  { %154 = vmatprep.subr.mxu0 %v283_v1  ;;  %250 = vmatprep.subr.mxu1 %v283_v1 }
   0xa   :  { %155 = vmatpush1.msra.mxu0 %v237_v5  ;;  %268 = vmatpush1.msra.mxu1 %v237_v5 }
   0xb   :  { %156 = vmatprep.subr.mxu0 %v283_v1  ;;  %251 = vmatprep.subr.mxu1 %v283_v1 }
   0xc   :  { %157 = vmatpush1.msra.mxu0 %v236_v6  ;;  %269 = vmatpush1.msra.mxu1 %v236_v6 }
   0xd   :  { %158 = vmatprep.subr.mxu0 %v283_v1  ;;  %252 = vmatprep.subr.mxu1 %v283_v1 }
   0xe   :  { %159 = vmatpush1.msra.mxu0 %v235_v7  ;;  %270 = vmatpush1.msra.mxu1 %v235_v7 }
   0xf   :  { %160 = vmatprep.subr.mxu0 %v283_v1  ;;  %253 = vmatprep.subr.mxu1 %v283_v1 }
  0x10   :  { %161 = vmatpush1.msra.mxu0 %v234_v8  ;;  %271 = vmatpush1.msra.mxu1 %v234_v8 }
  0x11   :  { %162 = vmatprep.subr.mxu0 %v283_v1  ;;  %254 = vmatprep.subr.mxu1 %v283_v1 }
  0x12   :  { %163 = vmatpush1.msra.mxu0 %v233_v9  ;;  %272 = vmatpush1.msra.mxu1 %v233_v9 }
  0x13   :  { %164 = vmatprep.subr.mxu0 %v283_v1  ;;  %255 = vmatprep.subr.mxu1 %v283_v1 }
  0x14   :  { %165 = vmatpush1.msra.mxu0 %v232_v10  ;;  %273 = vmatpush1.msra.mxu1 %v232_v10 }
  0x15   :  { %166 = vmatprep.subr.mxu0 %v283_v1  ;;  %256 = vmatprep.subr.mxu1 %v283_v1 }
  0x16   :  { %167 = vmatpush1.msra.mxu0 %v231_v11  ;;  %274 = vmatpush1.msra.mxu1 %v231_v11 }
  0x17   :  { %168 = vmatprep.subr.mxu0 %v283_v1  ;;  %257 = vmatprep.subr.mxu1 %v283_v1 }
  0x18   :  { %169 = vmatpush1.msra.mxu0 %v230_v12  ;;  %275 = vmatpush1.msra.mxu1 %v230_v12 }
  0x19   :  { %170 = vmatprep.subr.mxu0 %v283_v1  ;;  %258 = vmatprep.subr.mxu1 %v283_v1 }
  0x1a   :  { %171 = vmatpush1.msra.mxu0 %v229_v13  ;;  %276 = vmatpush1.msra.mxu1 %v229_v13 }
  0x1b   :  { %172 = vmatprep.subr.mxu0 %v283_v1  ;;  %259 = vmatprep.subr.mxu1 %v283_v1 }
  0x1c   :  { %173 = vmatpush1.msra.mxu0 %v228_v14  ;;  %277 = vmatpush1.msra.mxu1 %v228_v14 }
  0x1d   :  { %174 = vmatprep.subr.mxu0 %v283_v1  ;;  %260 = vmatprep.subr.mxu1 %v283_v1 }
  0x1e   :  { %175 = vmatpush1.msra.mxu0 %v227_v15  ;;  %278 = vmatpush1.msra.mxu1 %v227_v15 }
  0x1f   :  { %176 = vmatprep.subr.mxu0 %v283_v1  ;;  %261 = vmatprep.subr.mxu1 %v283_v1 }
  0x20   :  { %177 = vmatpush1.msra.mxu0 %v11_v16  ;;  %279 = vmatpush1.msra.mxu1 %v11_v16 }
  0x21   :  { %206 = vmatprep.subr.mxu0 %v283_v1  ;;  %262 = vmatprep.subr.mxu1 %v283_v1 }
  0x22   :  { %207 = vmatpush2.msra.mxu0 %v243_v17  ;;  %280 = vmatpush2.msra.mxu1 %v243_v17 }
  0x23   :  { %208 = vmatprep.subr.mxu0 %v283_v1  ;;  %263 = vmatprep.subr.mxu1 %v283_v1 }
  0x24   :  { %209 = vmatpush2.msra.mxu0 %v242_v18  ;;  %281 = vmatpush2.msra.mxu1 %v242_v18 }
  0x25   :  { %244 = vmatprep.mubr.msk.f32.mxu0 %vm139_vm0, %v118_v19  ;;  %245 = vmatprep.mubr.msk.f32.mxu1 %vm139_vm0, %v120_v20 }
  0x26   :  { %211 = vmatmul.mubr.f32.vlgmr.msra.gmra.mxu0 %v117_v21  ;;  %216 = vmatmul.mubr.f32.vlgmr.msra.gmra.mxu1 %v119_v22 }
  0xe6   :  { %v212_v23 = vpop.f32.mrf.mxu0  ;;  %v217_v24 = vpop.f32.mrf.mxu1 }
  0xe7   :  { %221 = vst [vmem:[%s409_s2] sm:$0xff] %v212_v23  ;;  %222 = vst [vmem:[%s409_s2 + $0x8] sm:$0xff] %v217_v24 }
  0xe8   :  { %v214_v25 = vpop.f32.mrf.mxu0  ;;  %v219_v26 = vpop.f32.mrf.mxu1 }

</bundles_post_ra>
